<compile_context>
chip_gen: v5e
topology: v5e:2x2
jax: 0.10.0
libtpu: 0.0.40
codegen_flags: <defaults>
</compile_context>

<pallas_src>
import functools

import jax
import jax.numpy as jnp
from jax.experimental import pallas as pl
from jax.experimental.pallas import tpu as pltpu


EMBED = 640   # RNA-FM embedding size
NODES = 40    # hidden width of the fc layer
NOUT = 2      # binary classifier


def _round_up(x, m):
    return ((x + m - 1) // m) * m


def _head_kernel(x_ref, w1_ref, b1_ref, dw_ref, db_ref, logit_ref):
    # x_ref : [tile, 640]  activation stream (f32 or bf16; cast to bf16 here
    #                       so the VPU cast hides under the input DMA)
    # w1_ref: [640, 40] bf16     b1_ref: [1, 40] f32
    # dw_ref: [1, 40]  f32 (w2[:,1]-w2[:,0])    db_ref: [1, 1] f32 (b2[1]-b2[0])
    # logit_ref: [1, 1, tile] f32  lane-dense class-1-minus-class-0 logit
    xb = x_ref[...].astype(jnp.bfloat16)

    # fc: Linear(640 -> 40), bf16 MXU inputs, f32 accumulation; bias + ReLU.
    h = jnp.dot(xb, w1_ref[...], preferred_element_type=jnp.float32)
    h = jnp.maximum(h + b1_ref[...], 0.0)
    # Dropout(p=0.2) -> identity at inference (no-op).

    # output: Linear(40 -> 2) collapsed to the logit difference o1 - o0,
    # computed directly in lane-major (1, tile) layout by contracting the
    # 40-dim of both operands (dw @ h^T), so the single output row is a
    # full-width unmasked store instead of 1-of-128-lane masked partials.
    logit = jax.lax.dot_general(
        dw_ref[...], h,
        dimension_numbers=(((1,), (1,)), ((), ())),
        preferred_element_type=jnp.float32,
    ) + db_ref[...]
    logit_ref[0] = logit


@functools.partial(jax.jit, static_argnames=("tile_b",))
def rnafm_linear_head(x_cls, w1, b1, w2, b2, *, tile_b=4096):
    """x_cls: [B, 640] CLS representation -> (y_prob[:, 1] f32, y_pred int32)."""
    B = x_cls.shape[0]

    # Batch tile: sublane granule is 8 for f32 streams, 16 for packed bf16.
    # Cap so (a) the tile is never larger than needed, (b) v7x's two
    # TensorCores both get at least one tile whenever B allows it.
    sub = 8 if jnp.dtype(x_cls.dtype).itemsize >= 4 else 16
    if B <= sub:
        tile = B                                           # one full-extent block
    else:
        tile = min(tile_b, _round_up(B, sub))
        tile = min(tile, _round_up(pl.cdiv(B, 2), sub))    # keep n_tiles >= 2
        tile = max(sub, _round_up(tile, sub))
    n_tiles = pl.cdiv(B, tile)

    # Small, VMEM-resident parameters (tiny one-time casts, fused by XLA).
    w1_bf = jnp.asarray(w1, jnp.float32).reshape(EMBED, NODES).astype(jnp.bfloat16)
    b1_f = jnp.asarray(b1, jnp.float32).reshape(1, NODES)
    w2_f = jnp.asarray(w2, jnp.float32).reshape(NODES, NOUT)
    b2_f = jnp.asarray(b2, jnp.float32).reshape(NOUT)
    dw = (w2_f[:, 1] - w2_f[:, 0]).reshape(1, NODES)       # class-1 minus class-0
    db = (b2_f[1] - b2_f[0]).reshape(1, 1)

    const = lambda shape: pl.BlockSpec(shape, lambda i: tuple(0 for _ in shape))

    x_bytes = B * EMBED * jnp.dtype(x_cls.dtype).itemsize
    cost = pl.CostEstimate(
        flops=2 * B * EMBED * NODES + 2 * B * NODES,
        transcendentals=0,
        bytes_accessed=x_bytes + B * 4 + EMBED * NODES * 2,
    )

    logit_tiles = pl.pallas_call(
        _head_kernel,
        out_shape=jax.ShapeDtypeStruct((n_tiles, 1, tile), jnp.float32),
        grid=(n_tiles,),
        in_specs=[
            pl.BlockSpec((tile, EMBED), lambda i: (i, 0)),  # x: batch-tiled stream
            const((EMBED, NODES)),                          # w1 (bf16, VMEM-resident)
            const((1, NODES)),                              # b1
            const((1, NODES)),                              # dw
            const((1, 1)),                                  # db
        ],
        out_specs=pl.BlockSpec((1, 1, tile), lambda i: (i, 0, 0)),
        compiler_params=pltpu.CompilerParams(
            dimension_semantics=("parallel",),
            # Double-buffered f32 x at tile=4096 is ~21 MiB; this raises v5e's
            # 16 MiB default scoped VMEM (no-op on v6e/v7x, default 32 MiB).
            vmem_limit_bytes=32 * 1024 * 1024,
        ),
        cost_estimate=cost,
    )(x_cls, w1_bf, b1_f, dw, db)

    logit = logit_tiles.reshape(-1)[:B]
    # softmax(o, dim=1)[:, 1] == sigmoid(o1 - o0); argmax == (o1 > o0) with
    # ties -> class 0, matching torch.argmax first-occurrence semantics.
    y_prob1 = jax.nn.sigmoid(logit)
    y_pred = (logit > 0.0).astype(jnp.int32)
    return y_prob1, y_pred


def init_params(key):
    """Deterministic synthetic parameters mimicking nn.Linear init shapes."""
    k1, k2, k3, k4 = jax.random.split(key, 4)
    bound1 = 1.0 / (EMBED ** 0.5)
    bound2 = 1.0 / (NODES ** 0.5)
    # stored as [in, out] (transpose of PyTorch's [out, in] Linear weight)
    w1 = jax.random.uniform(k1, (EMBED, NODES), jnp.float32, -bound1, bound1)
    b1 = jax.random.uniform(k2, (NODES,), jnp.float32, -bound1, bound1)
    w2 = jax.random.uniform(k3, (NODES, NOUT), jnp.float32, -bound2, bound2)
    b2 = jax.random.uniform(k4, (NOUT,), jnp.float32, -bound2, bound2)
    return w1, b1, w2, b2


if __name__ == "__main__":
    key = jax.random.PRNGKey(0)
    kx, kp = jax.random.split(key)

    B = 8  # small batch
    # Synthetic CLS representation standing in for rna_fm_t12 output [12][:, 0].
    x_cls = jax.random.normal(kx, (B, EMBED), dtype=jnp.float32)
    w1, b1, w2, b2 = init_params(kp)

    y_prob1, y_pred = rnafm_linear_head(x_cls, w1, b1, w2, b2)
    jax.block_until_ready((y_prob1, y_pred))

    # Reference in plain JAX (same bf16 rounding of x and w1 as the kernel).
    x_r = x_cls.astype(jnp.bfloat16).astype(jnp.float32)
    w1_r = w1.astype(jnp.bfloat16).astype(jnp.float32)
    h_r = jnp.maximum(x_r @ w1_r + b1[None, :], 0.0)
    o_r = h_r @ w2 + b2[None, :]
    p_r = jax.nn.softmax(o_r, axis=1)
    pred_r = (o_r[:, 1] > o_r[:, 0]).astype(jnp.int32)  # argmax, ties -> 0

    assert y_prob1.shape == (B,) and y_pred.shape == (B,)
    assert jnp.allclose(y_prob1, p_r[:, 1], atol=2e-3), "prob mismatch vs reference"
    assert jnp.array_equal(y_pred, pred_r), "argmax mismatch vs reference"

    print("KERNEL_OK")
</pallas_src>

<mosaic_0001>
module attributes {stable_mosaic.version = 11 : i64} {
  func.func @_head_kernel(%arg0: i32, %arg1: memref<8x640xf32, #tpu.memory_space<vmem>>, %arg2: memref<640x40xbf16, #tpu.memory_space<vmem>>, %arg3: memref<1x40xf32, #tpu.memory_space<vmem>>, %arg4: memref<1x40xf32, #tpu.memory_space<vmem>>, %arg5: memref<1x1xf32, #tpu.memory_space<vmem>>, %arg6: memref<1x1x8xf32, #tpu.memory_space<vmem>>) attributes {dimension_semantics = [#tpu.dimension_semantics<parallel>], iteration_bounds = array<i64: 1>, scalar_prefetch = 0 : i64, scratch_operands = 0 : i64, tpu.core_type = #tpu.core_type<tc>, window_params = [{transform_indices = @transform_0, window_bounds = array<i64: 8, 640>}, {pipeline_mode = #tpu.pipeline_mode<synchronous>, transform_indices = @transform_1, window_bounds = array<i64: 640, 40>}, {pipeline_mode = #tpu.pipeline_mode<synchronous>, transform_indices = @transform_2, window_bounds = array<i64: 1, 40>}, {pipeline_mode = #tpu.pipeline_mode<synchronous>, transform_indices = @transform_3, window_bounds = array<i64: 1, 40>}, {pipeline_mode = #tpu.pipeline_mode<synchronous>, transform_indices = @transform_4, window_bounds = array<i64: 1, 1>}, {transform_indices = @transform_5, window_bounds = array<i64: 1, 1, 8>}]} {
    %c0 = arith.constant 0 : index
    %c0_0 = arith.constant 0 : index
    %0 = vector.load %arg1[%c0, %c0_0] : memref<8x640xf32, #tpu.memory_space<vmem>>, vector<8x640xf32>
    %1 = arith.truncf %0 : vector<8x640xf32> to vector<8x640xbf16>
    %c0_1 = arith.constant 0 : index
    %c0_2 = arith.constant 0 : index
    %2 = vector.load %arg2[%c0_1, %c0_2] : memref<640x40xbf16, #tpu.memory_space<vmem>>, vector<640x40xbf16>
    %cst = arith.constant dense<0.000000e+00> : vector<8x40xf32>
    %3 = tpu.matmul %1, %2, %cst {dimension_numbers = #tpu.dot_dimension_numbers<[1], [0], [0], [1], [0, 0, 1, 1], [], []>} : vector<8x640xbf16>, vector<640x40xbf16>, vector<8x40xf32> -> vector<8x40xf32>
    %c0_3 = arith.constant 0 : index
    %c0_4 = arith.constant 0 : index
    %4 = vector.load %arg3[%c0_3, %c0_4] : memref<1x40xf32, #tpu.memory_space<vmem>>, vector<1x40xf32>
    %5 = vector.broadcast %4 : vector<1x40xf32> to vector<8x40xf32>
    %6 = arith.addf %3, %5 : vector<8x40xf32>
    %cst_5 = arith.constant 0.000000e+00 : f32
    %7 = vector.broadcast %cst_5 : f32 to vector<8x40xf32>
    %8 = arith.maximumf %6, %7 : vector<8x40xf32>
    %c0_6 = arith.constant 0 : index
    %c0_7 = arith.constant 0 : index
    %9 = vector.load %arg4[%c0_6, %c0_7] : memref<1x40xf32, #tpu.memory_space<vmem>>, vector<1x40xf32>
    %cst_8 = arith.constant dense<0.000000e+00> : vector<1x8xf32>
    %10 = tpu.matmul %9, %8, %cst_8 {dimension_numbers = #tpu.dot_dimension_numbers<[1], [1], [0], [0], [0, 0, 1, 0], [], []>} : vector<1x40xf32>, vector<8x40xf32>, vector<1x8xf32> -> vector<1x8xf32>
    %c0_9 = arith.constant 0 : index
    %c0_10 = arith.constant 0 : index
    %11 = vector.load %arg5[%c0_9, %c0_10] : memref<1x1xf32, #tpu.memory_space<vmem>>, vector<1x1xf32>
    %12 = vector.broadcast %11 : vector<1x1xf32> to vector<1x8xf32>
    %13 = arith.addf %10, %12 : vector<1x8xf32>
    %c0_11 = arith.constant 0 : index
    %c0_12 = arith.constant 0 : index
    %c0_13 = arith.constant 0 : index
    %14 = vector.load %arg6[%c0_11, %c0_12, %c0_13] : memref<1x1x8xf32, #tpu.memory_space<vmem>>, vector<1x1x8xf32>
    %15 = vector.shape_cast %14 : vector<1x1x8xf32> to vector<1x8xf32>
    %16 = vector.shape_cast %13 : vector<1x8xf32> to vector<1x1x8xf32>
    tpu.vector_store %arg6[%c0_11, %c0_12, %c0_13], %16 {strides = array<i32>} : memref<1x1x8xf32, #tpu.memory_space<vmem>>, vector<1x1x8xf32>,
    return
  }
  func.func @transform_0(%arg0: i32) -> (i32, i32) {
    %c0_i32 = arith.constant 0 : i32
    %c0_i32_0 = arith.constant 0 : i32
    return %arg0, %c0_i32 : i32, i32
  }
  func.func @transform_1(%arg0: i32) -> (i32, i32) {
    %c0_i32 = arith.constant 0 : i32
    %c0_i32_0 = arith.constant 0 : i32
    %c0_i32_1 = arith.constant 0 : i32
    return %c0_i32, %c0_i32_0 : i32, i32
  }
  func.func @transform_2(%arg0: i32) -> (i32, i32) {
    %c0_i32 = arith.constant 0 : i32
    %c0_i32_0 = arith.constant 0 : i32
    %c0_i32_1 = arith.constant 0 : i32
    return %c0_i32, %c0_i32_0 : i32, i32
  }
  func.func @transform_3(%arg0: i32) -> (i32, i32) {
    %c0_i32 = arith.constant 0 : i32
    %c0_i32_0 = arith.constant 0 : i32
    %c0_i32_1 = arith.constant 0 : i32
    return %c0_i32, %c0_i32_0 : i32, i32
  }
  func.func @transform_4(%arg0: i32) -> (i32, i32) {
    %c0_i32 = arith.constant 0 : i32
    %c0_i32_0 = arith.constant 0 : i32
    %c0_i32_1 = arith.constant 0 : i32
    return %c0_i32, %c0_i32_0 : i32, i32
  }
  func.func @transform_5(%arg0: i32) -> (i32, i32, i32) {
    %c0_i32 = arith.constant 0 : i32
    %c0_i32_0 = arith.constant 0 : i32
    %c0_i32_1 = arith.constant 0 : i32
    return %arg0, %c0_i32, %c0_i32_0 : i32, i32, i32
  }
}

</mosaic_0001>

<bundles_post_ra>
// kernel: rnafm_linear_head.1
= control target key start
LH: loop header
LB: loop body
LE: loop exit
PB: predicated region body
PF: predicated region fallthrough
CT: control target
= control target key end

     0   :  { %v668_v53 = vmov 0   ;;  %vm430_vm0 = vcmask 326656   ;;  %vm457_vm1 = vcmask 57344   ;;  %s846_s1 = inlined_call_operand.vmem [shape: bf16[640,40], index: 1, kind: input, shape index: {}]   ;;  %s847_s2 = inlined_call_operand.vmem [shape: f32[1,40], index: 2, kind: input, shape index: {}]   ;;  %s848_s0 = inlined_call_operand.vmem [shape: f32[8,640], index: 0, kind: input, shape index: {}]   ;;  %s849_s4 = inlined_call_operand.<no memory space> [shape: f32[1,1], index: 4, kind: input, shape index: {}]   ;;  %s850_s3 = inlined_call_operand.vmem [shape: f32[1,40], index: 3, kind: input, shape index: {}]   ;;  %s851_s5 = inlined_call_operand.vmem [shape: f32[1,1,8], index: 5, kind: output, shape index: {}]  }
   0x1   :  { %v632_v0 = vld [vmem:[%s846_s1 + $0x38] sm:$0xff]  ;;  %v631_v3 = vld [vmem:[%s846_s1 + $0x30] sm:$0xff]  ;;  %v630_v8 = vld [vmem:[%s846_s1 + $0x28] sm:$0xff]  ;;  %v10_v52 = vstv %s849_s4  ;;  %666 = vset.pattern.permute.xlu0 %v668_v53 }
   0x2   :  { %v648_v1 = vld [vmem:[%s846_s1 + $0xb8] sm:$0xff]  ;;  %356 = vmatpush.bf16.msra.mxu0 %v632_v0  ;;  %v647_v5 = vld [vmem:[%s846_s1 + $0xb0] sm:$0xff]  ;;  %v646_v9 = vld [vmem:[%s846_s1 + $0xa8] sm:$0xff]  ;;  %11 = vst [vmem:[#allocation2] sm:$0x1] %v10_v52 }
   0x3   :  { %v656_v2 = vld [vmem:[%s846_s1 + $0xf8] sm:$0xff]  ;;  %382 = vmatpush.bf16.msra.mxu2 %v648_v1  ;;  %v655_v6 = vld [vmem:[%s846_s1 + $0xf0] sm:$0xff]  ;;  %v654_v10 = vld [vmem:[%s846_s1 + $0xe8] sm:$0xff] }
   0x4   :  { %v640_v4 = vld [vmem:[%s846_s1 + $0x78] sm:$0xff]  ;;  %395 = vmatpush.bf16.msra.mxu3 %v656_v2  ;;  %v639_v7 = vld [vmem:[%s846_s1 + $0x70] sm:$0xff]  ;;  %v638_v11 = vld [vmem:[%s846_s1 + $0x68] sm:$0xff] }
   0x5   :  { %369 = vmatpush.bf16.msra.mxu1 %v640_v4  ;;  %v629_v12 = vld [vmem:[%s846_s1 + $0x20] sm:$0xff]  ;;  %v628_v16 = vld [vmem:[%s846_s1 + $0x18] sm:$0xff]  ;;  %v627_v20 = vld [vmem:[%s846_s1 + $0x10] sm:$0xff] }
   0x6   :  { %357 = vmatpush.bf16.msra.mxu0 %v631_v3  ;;  %v645_v13 = vld [vmem:[%s846_s1 + $0xa0] sm:$0xff]  ;;  %v644_v17 = vld [vmem:[%s846_s1 + $0x98] sm:$0xff]  ;;  %v643_v21 = vld [vmem:[%s846_s1 + $0x90] sm:$0xff] }
   0x7   :  { %383 = vmatpush.bf16.msra.mxu2 %v647_v5  ;;  %v653_v14 = vld [vmem:[%s846_s1 + $0xe0] sm:$0xff]  ;;  %v652_v18 = vld [vmem:[%s846_s1 + $0xd8] sm:$0xff]  ;;  %v651_v22 = vld [vmem:[%s846_s1 + $0xd0] sm:$0xff] }
   0x8   :  { %396 = vmatpush.bf16.msra.mxu3 %v655_v6  ;;  %v637_v15 = vld [vmem:[%s846_s1 + $0x60] sm:$0xff]  ;;  %v636_v19 = vld [vmem:[%s846_s1 + $0x58] sm:$0xff]  ;;  %v635_v23 = vld [vmem:[%s846_s1 + $0x50] sm:$0xff] }
   0x9   :  { %370 = vmatpush.bf16.msra.mxu1 %v639_v7  ;;  %v626_v24 = vld [vmem:[%s846_s1 + $0x8] sm:$0xff]  ;;  %v625_v28 = vld [vmem:[%s846_s1] sm:$0xff]  ;;  %v664_v30 = vld [vmem:[%s846_s1 + $0x138] sm:$0xff] }
   0xa   :  { %358 = vmatpush.bf16.msra.mxu0 %v630_v8  ;;  %v642_v25 = vld [vmem:[%s846_s1 + $0x88] sm:$0xff]  ;;  %v22_v29 = vld [vmem:[%s848_s0] sm:$0xff]  ;;  %v24_v32 = vld [vmem:[%s848_s0 + $0x10] sm:$0xff] }
   0xb   :  { %384 = vmatpush.bf16.msra.mxu2 %v646_v9  ;;  %v650_v26 = vld [vmem:[%s846_s1 + $0xc8] sm:$0xff]  ;;  %v641_v31 = vld [vmem:[%s846_s1 + $0x80] sm:$0xff]  ;;  %v25_v35 = vld [vmem:[%s848_s0 + $0x18] sm:$0xff]  ;;  %v27_v36 = vpack.c.bf16 %v22_v29, %v22_v29  ;;  %v29_v38 = vpack.c.bf16 %v24_v32, %v24_v32 }
   0xc   :  { %397 = vmatpush.bf16.msra.mxu3 %v654_v10  ;;  %v634_v27 = vld [vmem:[%s846_s1 + $0x48] sm:$0xff]  ;;  %v649_v33 = vld [vmem:[%s846_s1 + $0xc0] sm:$0xff]  ;;  %v663_v39 = vld [vmem:[%s846_s1 + $0x130] sm:$0xff]  ;;  %v30_v40 = vpack.c.bf16 %v25_v35, %v25_v35 }
   0xd   :  { %371 = vmatpush.bf16.msra.mxu1 %v638_v11  ;;  %v633_v34 = vld [vmem:[%s846_s1 + $0x40] sm:$0xff]  ;;  %v23_v37 = vld [vmem:[%s848_s0 + $0x8] sm:$0xff]  ;;  %v660_v44 = vld [vmem:[%s846_s1 + $0x118] sm:$0xff] }
   0xe   :  { %359 = vmatpush.bf16.msra.mxu0 %v629_v12  ;;  %v28_v41 = vpack.c.bf16 %v23_v37, %v23_v37  ;;  %v662_v42 = vld [vmem:[%s846_s1 + $0x128] sm:$0xff]  ;;  %v661_v43 = vld [vmem:[%s846_s1 + $0x120] sm:$0xff]  ;;  %v659_v45 = vld [vmem:[%s846_s1 + $0x110] sm:$0xff] }
   0xf   :  { %385 = vmatpush.bf16.msra.mxu2 %v645_v13  ;;  %v658_v46 = vld [vmem:[%s846_s1 + $0x108] sm:$0xff]  ;;  %v657_v47 = vld [vmem:[%s846_s1 + $0x100] sm:$0xff] }
  0x10   :  { %398 = vmatpush.bf16.msra.mxu3 %v653_v14  ;;  %v26_v48 = vld [vmem:[%s848_s0 + $0x20] sm:$0xff] }
  0x11   :  { %372 = vmatpush.bf16.msra.mxu1 %v637_v15  ;;  %v31_v49 = vpack.c.bf16 %v26_v48, %v26_v48  ;;  %v667_v58 = vld [vmem:[%s847_s2] ss:$0 sm:$0xff] }
  0x12   :  { %360 = vmatpush.bf16.msra.mxu0 %v628_v16  ;;  %v423_v59 = vld [vmem:[#allocation2] sm:$0x1] }
  0x13   :  { %386 = vmatpush.bf16.msra.mxu2 %v644_v17  ;;  %426 = vperm.xlu0 %666, %v423_v59   ;;  %v422_v5 = vld [vmem:[%s850_s3] sm:$0x1] }
  0x14   :  { %399 = vmatpush.bf16.msra.mxu3 %v652_v18 }
  0x15   :  { %373 = vmatpush.bf16.msra.mxu1 %v636_v19 }
  0x16   :  { %361 = vmatpush.bf16.msra.mxu0 %v627_v20 }
  0x17   :  { %387 = vmatpush.bf16.msra.mxu2 %v643_v21 }
  0x18   :  { %400 = vmatpush.bf16.msra.mxu3 %v651_v22 }
  0x19   :  { %374 = vmatpush.bf16.msra.mxu1 %v635_v23 }
  0x1a   :  { %362 = vmatpush.bf16.msra.mxu0 %v626_v24 }
  0x1b   :  { %388 = vmatpush.bf16.msra.mxu2 %v642_v25 }
  0x1c   :  { %401 = vmatpush.bf16.msra.mxu3 %v650_v26 }
  0x1d   :  { %375 = vmatpush.bf16.msra.mxu1 %v634_v27 }
  0x1e   :  { %363 = vmatpush.bf16.msra.mxu0 %v625_v28 }
  0x1f   :  { %389 = vmatpush.bf16.msra.mxu2 %v641_v31 }
  0x20   :  { %402 = vmatpush.bf16.msra.mxu3 %v649_v33 }
  0x21   :  { %376 = vmatpush.bf16.msra.mxu1 %v633_v34  ;;  %364 = vmatmul.bf16.vlgmr.msra.gmra.mxu0 %v27_v36 }
  0x22   :  { %408 = vmatpush.bf16.msrb.mxu0 %v664_v30  ;;  %390 = vmatmul.bf16.vlgmr.msra.gmra.mxu2 %v29_v38 }
  0x23   :  { %403 = vmatmul.bf16.vlgmr.msra.gmra.mxu3 %v30_v40 }
  0x24   :  { %377 = vmatmul.bf16.vlgmr.msra.gmra.mxu1 %v28_v41 }
  0x26   :  { %409 = vmatpush.bf16.msrb.mxu0 %v663_v39 }
  0x2a   :  { %410 = vmatpush.bf16.msrb.mxu0 %v662_v42 }
  0x2e   :  { %411 = vmatpush.bf16.msrb.mxu0 %v661_v43 }
  0x32   :  { %412 = vmatpush.bf16.msrb.mxu0 %v660_v44 }
  0x36   :  { %413 = vmatpush.bf16.msrb.mxu0 %v659_v45 }
  0x3a   :  { %414 = vmatpush.bf16.msrb.mxu0 %v658_v46 }
  0x3e   :  { %415 = vmatpush.bf16.msrb.mxu0 %v657_v47 }
  0x41   :  { %416 = vmatmul.bf16.vlgmr.msrb.gmra.mxu0 %v31_v49 }
  0x85   :  { %v427_v7 = vpop.permute.xlu0 %426 }
  0x86   :  { %v429_v8 = vperm.slane %v427_v7, 0 }
  0x9e   :  { %v365_v50 = vpop.f32.mrf.mxu0 }
  0x9f   :  { %v366_v61 = vadd.f32 %v667_v58, %v365_v50 }
  0xa1   :  { %v378_v51 = vpop.f32.mrf.mxu1 }
  0xa2   :  { %v379_v63 = vadd.f32 %v378_v51, %v366_v61 }
  0xa5   :  { %v391_v54 = vpop.f32.mrf.mxu2 }
  0xa6   :  { %v367_v55 = vpop.f32.mrf.mxu0  ;;  %v404_v56 = vpop.f32.mrf.mxu3  ;;  %v392_v0 = vadd.f32 %v391_v54, %v379_v63 }
  0xa8   :  { %v405_v1 = vadd.f32 %v404_v56, %v392_v0 }
  0xa9   :  { %v380_v57 = vpop.f32.mrf.mxu1 }
  0xad   :  { %v393_v60 = vpop.f32.mrf.mxu2 }
  0xae   :  { %v406_v62 = vpop.f32.mrf.mxu3 }
  0xbe   :  { %v417_v2 = vpop.f32.mrf.mxu0 }
  0xbf   :  { %v418_v3 = vadd.f32 %v417_v2, %v405_v1 }
  0xc1   :  { %v421_v4 = vmax.f32 %v418_v3, 0.0 }
  0xc3   :  { %623 = vmatpush.xpose.msk.msrb.mxu1 %vm430_vm0, %v421_v4 }
  0xc6   :  { %v419_v6 = vpop.f32.mrf.mxu0  ;;  %624 = vmatmul.msk.f32.vlgmr.msrb.gmra.mxu1 %vm430_vm0, %v422_v5 }
 0x143   :  { %v454_v9 = vpop.f32.mrf.mxu1 }
 0x144   :  { %v455_v10 = vadd.f32 %v454_v9, %v429_v8 }
 0x146   :  { %458 = vst.msk [vmem:[%s851_s5] sm:$0x1] %vm457_vm1, %v455_v10 }

</bundles_post_ra>
